<compile_context>
chip_gen: v7x
topology: tpu7x:2x2x1
jax: 0.10.0
libtpu: 0.0.40
codegen_flags: <defaults>
</compile_context>

<pallas_src>
import jax
import jax.numpy as jnp
from jax.experimental import pallas as pl
from jax.experimental.pallas import tpu as pltpu

IN_FEATURES = 28 * 28   # 784
HIDDEN = 100
OUT_FEATURES = 10
HIDDEN_PAD = 128        # lane-dense hidden width (zero padding is exact, see header)
OUT_PAD = 16            # narrow output pad: 64 B/row f32 writeback instead of 512 B/row
LANE = 128


def _round_up(n, m):
    return (n + m - 1) // m * m


def mlp_kernel(x_ref, w1_ref, b1_ref, w2_ref, b2_ref, o_ref):
    # Cast the streamed activation tile to bf16 in-kernel (VPU work hidden under the
    # x DMA); weights were cast once in the wrapper.  MXU accumulates in f32.
    x = x_ref[...].astype(jnp.bfloat16)
    # fc1: (tb, 784) bf16 @ (784, 128) bf16 -> f32
    h = jnp.dot(x, w1_ref[...], preferred_element_type=jnp.float32)
    # bias + sigmoid in f32 (exp routes to the EUP slot, which has huge slack here)
    h = jax.nn.sigmoid(h + b1_ref[...])
    # fc2: (tb, 128) bf16 @ (128, 16) bf16 -> f32
    y = jnp.dot(h.astype(jnp.bfloat16), w2_ref[...],
                preferred_element_type=jnp.float32)
    o_ref[...] = (y + b2_ref[...]).astype(o_ref.dtype)


def mlp_forward(x, w1, b1, w2, b2, *, tb_max=2048):
    """Fused MLP forward.  x: (B, 1, 28, 28) or (B, 784).  Returns (B, 10) float32.

    tb_max is capped at 2048: with f32 activation tiles that is ~24 MiB of scoped VMEM
    (double-buffered), comfortably inside v7x's 64 MiB physical VMEM and already large
    enough that the per-grid-step pipeline overhead is amortised on v5e/v6e/v7x.
    """
    x2d = x.reshape(-1, IN_FEATURES)
    if x2d.dtype not in (jnp.float32, jnp.bfloat16):
        x2d = x2d.astype(jnp.float32)
    B = x2d.shape[0]

    # Sublane-align the row count.  For the common case (B % 8 == 0) this is a no-op,
    # so x reaches the kernel with zero extra HBM passes.
    rows = _round_up(max(B, 1), 8)
    if rows != B:
        x2d = jnp.pad(x2d, ((0, rows - B), (0, 0)))

    # Batch tile: multiple of 8, <= 2048, and >= 2 grid steps whenever the batch allows
    # (so both v7x TensorCores get work under dimension_semantics=("parallel",)).
    tb = min(max(8, _round_up(min(tb_max, 2048), 8)), rows)
    if rows > 8 and pl.cdiv(rows, tb) < 2:
        tb = _round_up(pl.cdiv(rows, 2), 8)
    grid = (pl.cdiv(rows, tb),)

    # Lane-dense zero-padded parameters (padding must be exactly zero; weights cast to
    # bf16 once here -- they are tiny compared with the activation stream).
    w1_p = jnp.zeros((IN_FEATURES, HIDDEN_PAD), jnp.bfloat16)
    w1_p = w1_p.at[:, :HIDDEN].set(w1.reshape(IN_FEATURES, HIDDEN).astype(jnp.bfloat16))
    b1_p = jnp.zeros((1, HIDDEN_PAD), jnp.float32)
    b1_p = b1_p.at[:, :HIDDEN].set(b1.reshape(1, HIDDEN).astype(jnp.float32))
    w2_p = jnp.zeros((HIDDEN_PAD, OUT_PAD), jnp.bfloat16)
    w2_p = w2_p.at[:HIDDEN, :OUT_FEATURES].set(
        w2.reshape(HIDDEN, OUT_FEATURES).astype(jnp.bfloat16))
    b2_p = jnp.zeros((1, OUT_PAD), jnp.float32)
    b2_p = b2_p.at[:, :OUT_FEATURES].set(
        b2.reshape(1, OUT_FEATURES).astype(jnp.float32))

    # Explicit scoped-VMEM limit (v5e's 16 MiB default is too small for f32 x tiles at
    # tb=2048).  Estimate the footprint, add margin, stay under v7x's 64 MiB physical.
    xb = x2d.dtype.itemsize
    in_lanes = _round_up(IN_FEATURES, LANE)          # 784 -> 896 lanes in VMEM
    vmem_need = (2 * tb * in_lanes * xb              # double-buffered x tiles
                 + 2 * tb * LANE * 4                 # double-buffered out tiles (16->128 lanes)
                 + tb * in_lanes * 2                 # in-kernel bf16 copy of the x tile
                 + tb * HIDDEN_PAD * (4 + 2 + 4)     # h (f32), h (bf16), y (f32) temporaries
                 + 2 * (IN_FEATURES * HIDDEN_PAD + HIDDEN_PAD * LANE) * 2  # resident weights
                 + (1 << 16))
    vmem_limit = min(max(int(vmem_need * 1.5), 32 * 1024 * 1024), 56 * 1024 * 1024)

    flops = 2 * rows * (IN_FEATURES * HIDDEN_PAD + HIDDEN_PAD * OUT_PAD)
    bytes_accessed = (rows * IN_FEATURES * xb                               # x in
                      + (IN_FEATURES * HIDDEN_PAD + HIDDEN_PAD * OUT_PAD) * 2
                      + (HIDDEN_PAD + OUT_PAD) * 4
                      + rows * OUT_PAD * 4)                                 # out (f32, 16 lanes)

    out_p = pl.pallas_call(
        mlp_kernel,
        out_shape=jax.ShapeDtypeStruct((rows, OUT_PAD), jnp.float32),
        grid=grid,
        in_specs=[
            pl.BlockSpec((tb, IN_FEATURES), lambda i: (i, 0)),           # streamed x tile
            pl.BlockSpec((IN_FEATURES, HIDDEN_PAD), lambda i: (0, 0)),   # resident w1
            pl.BlockSpec((1, HIDDEN_PAD), lambda i: (0, 0)),             # resident b1
            pl.BlockSpec((HIDDEN_PAD, OUT_PAD), lambda i: (0, 0)),       # resident w2
            pl.BlockSpec((1, OUT_PAD), lambda i: (0, 0)),                # resident b2
        ],
        out_specs=pl.BlockSpec((tb, OUT_PAD), lambda i: (i, 0)),
        compiler_params=pltpu.CompilerParams(
            dimension_semantics=("parallel",),
            vmem_limit_bytes=vmem_limit),
        cost_estimate=pl.CostEstimate(
            flops=flops,
            transcendentals=rows * HIDDEN_PAD,
            bytes_accessed=bytes_accessed),
    )(x2d, w1_p, b1_p, w2_p, b2_p)

    out = out_p[:, :OUT_FEATURES]
    if rows != B:
        out = out[:B]
    return out


def init_params(key):
    """Deterministic init mimicking nn.Linear's U(-1/sqrt(fan_in), 1/sqrt(fan_in))."""
    k1, k2, k3, k4 = jax.random.split(key, 4)
    bound1 = 1.0 / jnp.sqrt(784.0)
    bound2 = 1.0 / jnp.sqrt(100.0)
    # stored as (in, out) so the kernel computes x @ W
    w1 = jax.random.uniform(k1, (IN_FEATURES, HIDDEN), jnp.float32, -bound1, bound1)
    b1 = jax.random.uniform(k2, (1, HIDDEN), jnp.float32, -bound1, bound1)
    w2 = jax.random.uniform(k3, (HIDDEN, OUT_FEATURES), jnp.float32, -bound2, bound2)
    b2 = jax.random.uniform(k4, (1, OUT_FEATURES), jnp.float32, -bound2, bound2)
    return w1, b1, w2, b2


if __name__ == "__main__":
    key = jax.random.PRNGKey(0)
    kx, kp = jax.random.split(key)
    # Small batch, MNIST-shaped NCHW input as the module's view(-1, 784) implies.
    x = jax.random.normal(kx, (2, 1, 28, 28), jnp.float32)
    w1, b1, w2, b2 = init_params(kp)

    out = mlp_forward(x, w1, b1, w2, b2)
    out = jax.block_until_ready(out)

    # Pure-JAX f32 reference (kernel uses bf16 matmul inputs -> loose tolerance).
    x2d = x.reshape(-1, IN_FEATURES)
    ref = jax.nn.sigmoid(x2d @ w1 + b1) @ w2 + b2
    assert out.shape == (2, OUT_FEATURES), out.shape
    assert jnp.allclose(out, ref, atol=2e-2, rtol=2e-2), (
        f"max abs err {jnp.max(jnp.abs(out - ref))}")

    print("KERNEL_OK")
</pallas_src>

<mosaic_0001>
module attributes {stable_mosaic.version = 11 : i64} {
  func.func @mlp_kernel(%arg0: i32, %arg1: memref<8x784xf32, #tpu.memory_space<vmem>>, %arg2: memref<784x128xbf16, #tpu.memory_space<vmem>>, %arg3: memref<1x128xf32, #tpu.memory_space<vmem>>, %arg4: memref<128x16xbf16, #tpu.memory_space<vmem>>, %arg5: memref<1x16xf32, #tpu.memory_space<vmem>>, %arg6: memref<8x16xf32, #tpu.memory_space<vmem>>) attributes {dimension_semantics = [#tpu.dimension_semantics<parallel>], iteration_bounds = array<i64: 1>, scalar_prefetch = 0 : i64, scratch_operands = 0 : i64, tpu.core_type = #tpu.core_type<tc>, window_params = [{transform_indices = @transform_0, window_bounds = array<i64: 8, 784>}, {pipeline_mode = #tpu.pipeline_mode<synchronous>, transform_indices = @transform_1, window_bounds = array<i64: 784, 128>}, {pipeline_mode = #tpu.pipeline_mode<synchronous>, transform_indices = @transform_2, window_bounds = array<i64: 1, 128>}, {pipeline_mode = #tpu.pipeline_mode<synchronous>, transform_indices = @transform_3, window_bounds = array<i64: 128, 16>}, {pipeline_mode = #tpu.pipeline_mode<synchronous>, transform_indices = @transform_4, window_bounds = array<i64: 1, 16>}, {transform_indices = @transform_5, window_bounds = array<i64: 8, 16>}]} {
    %c0 = arith.constant 0 : index
    %c0_0 = arith.constant 0 : index
    %0 = vector.load %arg1[%c0, %c0_0] : memref<8x784xf32, #tpu.memory_space<vmem>>, vector<8x784xf32>
    %1 = arith.truncf %0 : vector<8x784xf32> to vector<8x784xbf16>
    %c0_1 = arith.constant 0 : index
    %c0_2 = arith.constant 0 : index
    %2 = vector.load %arg2[%c0_1, %c0_2] : memref<784x128xbf16, #tpu.memory_space<vmem>>, vector<784x128xbf16>
    %cst = arith.constant dense<0.000000e+00> : vector<8x128xf32>
    %3 = tpu.matmul %1, %2, %cst {dimension_numbers = #tpu.dot_dimension_numbers<[1], [0], [0], [1], [0, 0, 1, 1], [], []>} : vector<8x784xbf16>, vector<784x128xbf16>, vector<8x128xf32> -> vector<8x128xf32>
    %c0_3 = arith.constant 0 : index
    %c0_4 = arith.constant 0 : index
    %4 = vector.load %arg3[%c0_3, %c0_4] : memref<1x128xf32, #tpu.memory_space<vmem>>, vector<1x128xf32>
    %5 = vector.broadcast %4 : vector<1x128xf32> to vector<8x128xf32>
    %6 = arith.addf %3, %5 : vector<8x128xf32>
    %7 = arith.negf %6 : vector<8x128xf32>
    %8 = math.exp %7 : vector<8x128xf32>
    %cst_5 = arith.constant 1.000000e+00 : f32
    %9 = vector.broadcast %cst_5 : f32 to vector<8x128xf32>
    %10 = arith.addf %9, %8 : vector<8x128xf32>
    %11 = arith.divf %9, %10 : vector<8x128xf32>
    %12 = arith.truncf %11 : vector<8x128xf32> to vector<8x128xbf16>
    %c0_6 = arith.constant 0 : index
    %c0_7 = arith.constant 0 : index
    %13 = vector.load %arg4[%c0_6, %c0_7] : memref<128x16xbf16, #tpu.memory_space<vmem>>, vector<128x16xbf16>
    %cst_8 = arith.constant dense<0.000000e+00> : vector<8x16xf32>
    %14 = tpu.matmul %12, %13, %cst_8 {dimension_numbers = #tpu.dot_dimension_numbers<[1], [0], [0], [1], [0, 0, 1, 1], [], []>} : vector<8x128xbf16>, vector<128x16xbf16>, vector<8x16xf32> -> vector<8x16xf32>
    %c0_9 = arith.constant 0 : index
    %c0_10 = arith.constant 0 : index
    %15 = vector.load %arg5[%c0_9, %c0_10] : memref<1x16xf32, #tpu.memory_space<vmem>>, vector<1x16xf32>
    %16 = vector.broadcast %15 : vector<1x16xf32> to vector<8x16xf32>
    %17 = arith.addf %14, %16 : vector<8x16xf32>
    %c0_11 = arith.constant 0 : index
    %c0_12 = arith.constant 0 : index
    %18 = vector.load %arg6[%c0_11, %c0_12] : memref<8x16xf32, #tpu.memory_space<vmem>>, vector<8x16xf32>
    tpu.vector_store %arg6[%c0_11, %c0_12], %17 {strides = array<i32>} : memref<8x16xf32, #tpu.memory_space<vmem>>, vector<8x16xf32>,
    return
  }
  func.func @transform_0(%arg0: i32) -> (i32, i32) {
    %c0_i32 = arith.constant 0 : i32
    %c0_i32_0 = arith.constant 0 : i32
    return %arg0, %c0_i32 : i32, i32
  }
  func.func @transform_1(%arg0: i32) -> (i32, i32) {
    %c0_i32 = arith.constant 0 : i32
    %c0_i32_0 = arith.constant 0 : i32
    %c0_i32_1 = arith.constant 0 : i32
    return %c0_i32, %c0_i32_0 : i32, i32
  }
  func.func @transform_2(%arg0: i32) -> (i32, i32) {
    %c0_i32 = arith.constant 0 : i32
    %c0_i32_0 = arith.constant 0 : i32
    %c0_i32_1 = arith.constant 0 : i32
    return %c0_i32, %c0_i32_0 : i32, i32
  }
  func.func @transform_3(%arg0: i32) -> (i32, i32) {
    %c0_i32 = arith.constant 0 : i32
    %c0_i32_0 = arith.constant 0 : i32
    %c0_i32_1 = arith.constant 0 : i32
    return %c0_i32, %c0_i32_0 : i32, i32
  }
  func.func @transform_4(%arg0: i32) -> (i32, i32) {
    %c0_i32 = arith.constant 0 : i32
    %c0_i32_0 = arith.constant 0 : i32
    %c0_i32_1 = arith.constant 0 : i32
    return %c0_i32, %c0_i32_0 : i32, i32
  }
  func.func @transform_5(%arg0: i32) -> (i32, i32) {
    %c0_i32 = arith.constant 0 : i32
    %c0_i32_0 = arith.constant 0 : i32
    return %arg0, %c0_i32 : i32, i32
  }
}

</mosaic_0001>

<bundles_post_ra>
// kernel: tpu_custom_call.1
= control target key start
LH: loop header
LB: loop body
LE: loop exit
PB: predicated region body
PF: predicated region fallthrough
CT: control target
= control target key end

     0   :  { %10 = vsyncpa [#allocation3], 0  ;;  %s1152_s0 = inlined_call_operand.vmem [shape: f32[8,784], index: 0, kind: input, shape index: {}]   ;;  %s1153_s1 = inlined_call_operand.hbm [shape: bf16[784,128], index: 1, kind: input, shape index: {}]   ;;  %s1154_s2 = inlined_call_operand.vmem [shape: f32[1,128], index: 2, kind: input, shape index: {}]   ;;  %s1155_s3 = inlined_call_operand.vmem [shape: bf16[128,16], index: 3, kind: input, shape index: {}]   ;;  %s1156_s4 = inlined_call_operand.vmem [shape: f32[1,16], index: 4, kind: input, shape index: {}]   ;;  %s1157_s5 = inlined_call_operand.hbm [shape: f32[8,16], index: 5, kind: output, shape index: {}]  }
   0x1   :  { %11 = vsyncpa [#allocation4], 0  ;;  %s1026_s18 = smov [#allocation2]   ;;  %s978_s22 = scalar_lea.hbm %s1153_s1, 6272 }
   0x2   :  { %s19_s19 = sshll.u32 %s1026_s18, 4  ;;  %p979_p0 = scmp.ne.s32.totalorder %s1153_s1, %s978_s22  ;;  %s20_s19 = int_to_ptr.vmem [resolvable:$true] %s19_s19 }
   0x3   :  { %p982_p1 = scmp.lt.u32.totalorder %s978_s22, %s1153_s1 }
   0x5   :  { %p984_p2 = pnand %p982_p1, %p979_p0 }
   0x7   :  { %987 = shalt.err (!%p984_p2)
}
   0x8   :  { %s988_s27 = scalar_lea.vmem %s20_s19, 6272  ;;  %p993_p4 = scmp.lt.s32.totalorder %s20_s19, %s20_s19 }
   0x9   :  { %p989_p3 = scmp.ne.s32.totalorder %s20_s19, %s988_s27  ;;  %p994_p5 = scmp.lt.s32.totalorder %s988_s27, %s988_s27 }
   0xb   :  { %p995_p6 = por %p994_p5, %p993_p4 }
   0xd   :  { %p996_p7 = pnand %p995_p6, %p989_p3 }
   0xf   :  { %999 = shalt.err (!%p996_p7)
}
  0x10   :  { %s1027_s28 = smov 64   ;;  %s1028_s29 = smov 4  }
  0x11   :  { %25 = dma.hbm_to_vmem [thread:$0]  %s1153_s1, 6272, %s20_s19, [#allocation3], %s1027_s28, %s1027_s28, %s1028_s29  }
  0x12   :  { %1022 = dma.done.wait [#allocation3], 6272  }
  0x13   :  { %1023 = vsyncadd [#allocation3], 4294961024  ;;  %v917_v0 = vld [vmem:[#allocation2 + $0x40] sm:$0xff]   ;;  %v921_v4 = vld [vmem:[#allocation2 + $0x48] sm:$0xff]   ;;  %v1029_v44 = vmov 0.0   ;;  %vm1030_vm0 = vmmov 0  }
  0x14   :  { %v918_v1 = vld [vmem:[#allocation2] sm:$0xff]   ;;  %808 = vmatprep.subr.bf16.mxu0 %v917_v0  ;;  %v922_v5 = vld [vmem:[#allocation2 + $0x8] sm:$0xff]   ;;  %v925_v8 = vld [vmem:[#allocation2 + $0x50] sm:$0xff]   ;;  %vm449_vm1 = vcmask 130048   ;;  %s1031_s11 = smov [#allocation5]  }
  0x15   :  { %v919_v2 = vld [vmem:[#allocation2 + $0xc0] sm:$0xff]   ;;  %809 = vmatpush3.bf16.msra.mxu0 %v918_v1  ;;  %v923_v6 = vld [vmem:[#allocation2 + $0xc8] sm:$0xff]   ;;  %v926_v9 = vld [vmem:[#allocation2 + $0x10] sm:$0xff]   ;;  %s738_s12 = sshll.u32 %s1031_s11, 4  ;;  %s739_s12 = int_to_ptr.vmem [resolvable:$true] %s738_s12 }
  0x16   :  { %v920_v3 = vld [vmem:[#allocation2 + $0x80] sm:$0xff]   ;;  %830 = vmatprep.subr.bf16.mxu1 %v919_v2  ;;  %810 = vmatprep.subr.bf16.mxu0 %v921_v4  ;;  %v924_v7 = vld [vmem:[#allocation2 + $0x88] sm:$0xff]   ;;  %v927_v10 = vld [vmem:[#allocation2 + $0xd0] sm:$0xff]   ;;  %s1000_s13 = scalar_lea.vmem %s739_s12, 128  ;;  %p1005_p9 = scmp.lt.s32.totalorder %s739_s12, %s739_s12 }
  0x17   :  { %831 = vmatpush3.bf16.msra.mxu1 %v920_v3  ;;  %v928_v11 = vld [vmem:[#allocation2 + $0x90] sm:$0xff]   ;;  %v929_v12 = vld [vmem:[#allocation2 + $0x58] sm:$0xff]   ;;  %v933_v16 = vld [vmem:[#allocation2 + $0x60] sm:$0xff]   ;;  %p1001_p8 = scmp.ne.s32.totalorder %s739_s12, %s1000_s13  ;;  %p1006_p10 = scmp.lt.s32.totalorder %s1000_s13, %s1000_s13 }
  0x18   :  { %832 = vmatprep.subr.bf16.mxu1 %v923_v6  ;;  %v930_v13 = vld [vmem:[#allocation2 + $0x18] sm:$0xff]   ;;  %v934_v17 = vld [vmem:[#allocation2 + $0x20] sm:$0xff]   ;;  %v937_v20 = vld [vmem:[#allocation2 + $0x68] sm:$0xff]  }
  0x19   :  { %811 = vmatpush3.bf16.msra.mxu0 %v922_v5  ;;  %v931_v14 = vld [vmem:[#allocation2 + $0xd8] sm:$0xff]   ;;  %v935_v18 = vld [vmem:[#allocation2 + $0xe0] sm:$0xff]   ;;  %v938_v21 = vld [vmem:[#allocation2 + $0x28] sm:$0xff]   ;;  %p1007_p11 = por %p1006_p10, %p1005_p9 }
  0x1a   :  { %812 = vmatprep.subr.bf16.mxu0 %v925_v8  ;;  %v932_v15 = vld [vmem:[#allocation2 + $0x98] sm:$0xff]   ;;  %v936_v19 = vld [vmem:[#allocation2 + $0xa0] sm:$0xff]   ;;  %v939_v22 = vld [vmem:[#allocation2 + $0xe8] sm:$0xff]  }
  0x1b   :  { %833 = vmatpush3.bf16.msra.mxu1 %v924_v7  ;;  %v940_v23 = vld [vmem:[#allocation2 + $0xa8] sm:$0xff]   ;;  %v941_v24 = vld [vmem:[#allocation2 + $0x70] sm:$0xff]   ;;  %v945_v28 = vld [vmem:[#allocation2 + $0x78] sm:$0xff]   ;;  %p1008_p12 = pnand %p1007_p11, %p1001_p8 }
  0x1c   :  { %834 = vmatprep.subr.bf16.mxu1 %v927_v10  ;;  %v942_v25 = vld [vmem:[#allocation2 + $0x30] sm:$0xff]   ;;  %v946_v29 = vld [vmem:[#allocation2 + $0x38] sm:$0xff]   ;;  %v37_v31 = vld [vmem:[%s1152_s0 + $0x8] sm:$0xff] }
  0x1d   :  { %813 = vmatpush3.bf16.msra.mxu0 %v926_v9  ;;  %v943_v26 = vld [vmem:[#allocation2 + $0xf0] sm:$0xff]   ;;  %v947_v30 = vld [vmem:[#allocation2 + $0xf8] sm:$0xff]   ;;  %v44_v32 = vpack.c.bf16 %v37_v31, %v37_v31  ;;  %v36_v34 = vld [vmem:[%s1152_s0] sm:$0xff] }
  0x1e   :  { %814 = vmatprep.subr.bf16.mxu0 %v929_v12  ;;  %v944_v27 = vld [vmem:[#allocation2 + $0xb0] sm:$0xff]   ;;  %v948_v33 = vld [vmem:[#allocation2 + $0xb8] sm:$0xff]   ;;  %v43_v35 = vpack.c.bf16 %v36_v34, %v36_v34  ;;  %v949_v36 = vld [vmem:[#allocation2 + $0x140] sm:$0xff]  }
  0x1f   :  { %835 = vmatpush3.bf16.msra.mxu1 %v928_v11  ;;  %v39_v37 = vld [vmem:[%s1152_s0 + $0x18] sm:$0xff]  ;;  %485 = vmatprep.mubr.bf16.mxu0 %v44_v32  ;;  %v950_v39 = vld [vmem:[#allocation2 + $0x100] sm:$0xff]   ;;  %v38_v40 = vld [vmem:[%s1152_s0 + $0x10] sm:$0xff] }
  0x20   :  { %836 = vmatprep.subr.bf16.mxu1 %v931_v14  ;;  %v46_v38 = vpack.c.bf16 %v39_v37, %v39_v37  ;;  %v45_v41 = vpack.c.bf16 %v38_v40, %v38_v40  ;;  %v951_v42 = vld [vmem:[#allocation2 + $0x148] sm:$0xff]   ;;  %v953_v45 = vld [vmem:[#allocation2 + $0x150] sm:$0xff]   ;;  %v955_v47 = vld [vmem:[#allocation2 + $0x158] sm:$0xff]  }
  0x21   :  { %815 = vmatpush3.bf16.msra.mxu0 %v930_v13  ;;  %v952_v43 = vld [vmem:[#allocation2 + $0x108] sm:$0xff]   ;;  %v954_v46 = vld [vmem:[#allocation2 + $0x110] sm:$0xff]   ;;  %v956_v48 = vld [vmem:[#allocation2 + $0x118] sm:$0xff]  }
  0x22   :  { %816 = vmatprep.subr.bf16.mxu0 %v933_v16  ;;  %525 = vmatprep.mubr.bf16.mxu1 %v46_v38  ;;  %v957_v49 = vld [vmem:[#allocation2 + $0x160] sm:$0xff]   ;;  %v959_v51 = vld [vmem:[#allocation2 + $0x168] sm:$0xff]   ;;  %v961_v55 = vld [vmem:[#allocation2 + $0x170] sm:$0xff]  }
  0x23   :  { %837 = vmatpush3.bf16.msra.mxu1 %v932_v15  ;;  %v958_v50 = vld [vmem:[#allocation2 + $0x120] sm:$0xff]   ;;  %v960_v52 = vld [vmem:[#allocation2 + $0x128] sm:$0xff]   ;;  %v42_v57 = vld [vmem:[%s1152_s0 + $0x30] sm:$0xff] }
  0x24   :  { %838 = vmatprep.subr.bf16.mxu1 %v935_v18  ;;  %v965_v53 = vld [vmem:[#allocation2 + $0x180] sm:$0xff]   ;;  %v41_v54 = vld [vmem:[%s1152_s0 + $0x28] sm:$0xff]  ;;  %v49_v58 = vpack.c.bf16 %v42_v57, %v42_v57  ;;  %v962_v59 = vld [vmem:[#allocation2 + $0x130] sm:$0xff]  }
  0x25   :  { %817 = vmatpush3.bf16.msra.mxu0 %v934_v17  ;;  %v48_v56 = vpack.c.bf16 %v41_v54, %v41_v54  ;;  %v963_v60 = vld [vmem:[#allocation2 + $0x178] sm:$0xff]   ;;  %v40_v62 = vld [vmem:[%s1152_s0 + $0x20] sm:$0xff]  ;;  %v967_v1 = vld [vmem:[%s1155_s3 + $0x8] sm:$0xff]  }
  0x26   :  { %818 = vmatprep.subr.bf16.mxu0 %v937_v20  ;;  %v964_v61 = vld [vmem:[#allocation2 + $0x138] sm:$0xff]   ;;  %v47_v63 = vpack.c.bf16 %v40_v62, %v40_v62  ;;  %v966_v0 = vld [vmem:[%s1155_s3] sm:$0xff]   ;;  %v968_v2 = vld [vmem:[%s1155_s3 + $0x10] sm:$0xff]  }
  0x27   :  { %839 = vmatpush3.bf16.msra.mxu1 %v936_v19  ;;  %v969_v3 = vld [vmem:[%s1155_s3 + $0x18] sm:$0xff]   ;;  %v970_v4 = vld [vmem:[%s1155_s3 + $0x20] sm:$0xff]   ;;  %v971_v5 = vld [vmem:[%s1155_s3 + $0x28] sm:$0xff]  }
  0x28   :  { %840 = vmatprep.subr.bf16.mxu1 %v939_v22  ;;  %v972_v6 = vld [vmem:[%s1155_s3 + $0x30] sm:$0xff]   ;;  %v973_v7 = vld [vmem:[%s1155_s3 + $0x38] sm:$0xff]   ;;  %v747_v9 = vld [vmem:[%s1154_s2] ss:$0 sm:$0xff] }
  0x29   :  { %819 = vmatpush3.bf16.msra.mxu0 %v938_v21  ;;  %v799_v37 = vld [vmem:[%s1156_s4] ss:$0 sm:$0xff] }
  0x2a   :  { %820 = vmatprep.subr.bf16.mxu0 %v941_v24 }
  0x2b   :  { %841 = vmatpush3.bf16.msra.mxu1 %v940_v23 }
  0x2c   :  { %842 = vmatprep.subr.bf16.mxu1 %v943_v26 }
  0x2d   :  { %821 = vmatpush3.bf16.msra.mxu0 %v942_v25 }
  0x2e   :  { %822 = vmatprep.subr.bf16.mxu0 %v945_v28 }
  0x2f   :  { %843 = vmatpush3.bf16.msra.mxu1 %v944_v27 }
  0x30   :  { %844 = vmatprep.subr.bf16.mxu1 %v947_v30 }
  0x31   :  { %823 = vmatpush3.bf16.msra.mxu0 %v946_v29 }
  0x32   :  { %852 = vmatprep.subr.bf16.mxu0 %v949_v36 }
  0x33   :  { %845 = vmatpush3.bf16.msra.mxu1 %v948_v33 }
  0x34   :  { %486 = vmatmul.mubr.bf16.vlgmr.msra.gmra.mrb[0].mxu0 %v43_v35  ;;  %885 = vmatprep.subr.bf16.mxu1 %v1029_v44 }
  0x35   :  { %853 = vmatpush3.bf16.msra.mxu0 %v950_v39  ;;  %565 = vmatprep.mubr.bf16.mxu0 %v48_v56 }
  0x36   :  { %526 = vmatmul.mubr.bf16.vlgmr.msra.gmra.mrb[0].mxu1 %v45_v41  ;;  %854 = vmatprep.subr.bf16.mxu0 %v951_v42 }
  0x37   :  { %887 = vmatprep.mubr.msk.bf16.mxu1 %vm1030_vm0, %v1029_v44  ;;  %886 = vmatpush3.bf16.msra.mxu1 %v965_v53 }
  0x38   :  { %891 = vmatprep.subr.bf16.mxu1 %v1029_v44 }
  0x39   :  { %855 = vmatpush3.bf16.msra.mxu0 %v952_v43 }
  0x3a   :  { %856 = vmatprep.subr.bf16.mxu0 %v953_v45 }
  0x3d   :  { %857 = vmatpush3.bf16.msra.mxu0 %v954_v46 }
  0x3e   :  { %858 = vmatprep.subr.bf16.mxu0 %v955_v47  ;;  %888 = vmatmul.mubr.msk.bf16.vlgmr.msra.gmra.mrb[4].mxu1 %vm449_vm1, %v49_v58 }
  0x3f   :  { %907 = vmatprep.mubr.msk.bf16.mxu1 %vm1030_vm0, %v1029_v44  ;;  %892 = vmatpush3.bf16.msra.mxu1 %v966_v0 }
  0x40   :  { %893 = vmatprep.subr.bf16.mxu1 %v1029_v44 }
  0x41   :  { %859 = vmatpush3.bf16.msra.mxu0 %v956_v48 }
  0x42   :  { %860 = vmatprep.subr.bf16.mxu0 %v957_v49 }
  0x43   :  { %894 = vmatpush3.bf16.msra.mxu1 %v967_v1 }
  0x44   :  { %895 = vmatprep.subr.bf16.mxu1 %v1029_v44 }
  0x45   :  { %861 = vmatpush3.bf16.msra.mxu0 %v958_v50 }
  0x46   :  { %862 = vmatprep.subr.bf16.mxu0 %v959_v51 }
  0x47   :  { %896 = vmatpush3.bf16.msra.mxu1 %v968_v2 }
  0x48   :  { %897 = vmatprep.subr.bf16.mxu1 %v1029_v44 }
  0x49   :  { %863 = vmatpush3.bf16.msra.mxu0 %v960_v52 }
  0x4a   :  { %864 = vmatprep.subr.bf16.mxu0 %v961_v55 }
  0x4b   :  { %898 = vmatpush3.bf16.msra.mxu1 %v969_v3 }
  0x4c   :  { %899 = vmatprep.subr.bf16.mxu1 %v1029_v44 }
  0x4d   :  { %865 = vmatpush3.bf16.msra.mxu0 %v962_v59 }
  0x4e   :  { %866 = vmatprep.subr.bf16.mxu0 %v963_v60 }
  0x4f   :  { %900 = vmatpush3.bf16.msra.mxu1 %v970_v4 }
  0x50   :  { %901 = vmatprep.subr.bf16.mxu1 %v1029_v44 }
  0x51   :  { %867 = vmatpush3.bf16.msra.mxu0 %v964_v61 }
  0x53   :  { %902 = vmatpush3.bf16.msra.mxu1 %v971_v5 }
  0x54   :  { %566 = vmatmul.mubr.bf16.vlgmr.msra.gmra.mrb[4].mxu0 %v47_v63  ;;  %903 = vmatprep.subr.bf16.mxu1 %v1029_v44 }
  0x57   :  { %904 = vmatpush3.bf16.msra.mxu1 %v972_v6 }
  0x58   :  { %905 = vmatprep.subr.bf16.mxu1 %v1029_v44 }
  0x5b   :  { %906 = vmatpush3.bf16.msra.mxu1 %v973_v7 }
 0x107   :  { %v824_v8 = vpop.f32.mrb[0].mxu0 }
 0x108   :  { %v825_v10 = vpop.f32.mrb[1].mxu0 }
 0x109   :  { %v826_v11 = vadd.f32 %v825_v10, %v824_v8  ;;  %v827_v12 = vpop.f32.mrb[2].mxu0  ;;  %v846_v13 = vpop.f32.mrb[0].mxu1 }
 0x10a   :  { %v828_v14 = vpop.f32.mrb[3].mxu0  ;;  %v847_v16 = vpop.f32.mrb[1].mxu1 }
 0x10b   :  { %v488_v15 = vadd.f32 %v826_v11, %v747_v9  ;;  %v848_v17 = vadd.f32 %v847_v16, %v846_v13  ;;  %v849_v18 = vpop.f32.mrb[2].mxu1 }
 0x10c   :  { %v850_v19 = vpop.f32.mrb[3].mxu1 }
 0x10d   :  { %v528_v20 = vadd.f32 %v848_v17, %v488_v15 }
 0x111   :  { %v607_v21 = vpop.f32.mrb[4].mxu1 }
 0x112   :  { %v889_v22 = vpop.f32.mrb[5].mxu1 }
 0x113   :  { %v610_v23 = vpop.f32.mrb[6].mxu1 }
 0x114   :  { %v890_v24 = vpop.f32.mrb[7].mxu1 }
 0x127   :  { %v868_v25 = vpop.f32.mrb[4].mxu0 }
 0x128   :  { %v869_v26 = vpop.f32.mrb[5].mxu0 }
 0x129   :  { %v870_v27 = vadd.f32 %v869_v26, %v868_v25  ;;  %v871_v28 = vpop.f32.mrb[6].mxu0 }
 0x12a   :  { %v872_v29 = vpop.f32.mrb[7].mxu0 }
 0x12b   :  { %v568_v30 = vadd.f32 %v870_v27, %v528_v20 }
 0x12d   :  { %v608_v31 = vadd.f32 %v607_v21, %v568_v30 }
 0x12f   :  { %v798_v32 = vmul.f32 -1.442695, %v608_v31 }
 0x131   :  { %974 = vpow2.f32 %v798_v32 }
 0x13b   :  { %v975_v33 = vpop.eup %974 }
 0x13c   :  { %v616_v34 = vadd.f32 1.0, %v975_v33 }
 0x13e   :  { %976 = vrcp.f32 %v616_v34 }
 0x148   :  { %v977_v35 = vpop.eup %976 }
 0x149   :  { %v619_v36 = vpack.c.bf16 %v977_v35, %v977_v35 }
 0x14b   :  { %908 = vmatmul.mubr.bf16.vlgmr.msra.gmra.mrb[8].mxu1 %v619_v36 }
 0x21e   :  { %v725_v38 = vpop.f32.mrb[8].mxu1 }
 0x21f   :  { %v726_v39 = vadd.f32 %v799_v37, %v725_v38  ;;  %v909_v40 = vpop.f32.mrb[9].mxu1 }
 0x220   :  { %v728_v41 = vpop.f32.mrb[10].mxu1 }
 0x221   :  { %731 = vst.msk [vmem:[#allocation5] sm:$0xff] %vm449_vm1, %v726_v39  ;;  %v910_v42 = vpop.f32.mrb[11].mxu1 }
 0x222   :  { %1011 = shalt.err (!%p1008_p12)
}
 0x223   :  { %s1012_s4 = scalar_lea.hbm %s1157_s5, 128 }
 0x224   :  { %p1013_p13 = scmp.ne.s32.totalorder %s1157_s5, %s1012_s4  ;;  %p1016_p0 = scmp.lt.u32.totalorder %s1012_s4, %s1157_s5 }
 0x226   :  { %p1018_p1 = pnand %p1016_p0, %p1013_p13 }
 0x228   :  { %1021 = shalt.err (!%p1018_p1)
}
 0x229   :  { %741 = dma.vmem_to_hbm [thread:$0]  %s739_s12, 128, %s1157_s5, [#allocation4]  }
 0x22a   :  { %1024 = dma.done.wait [#allocation4], 128  }
 0x22b   :  { %1025 = vsyncadd [#allocation4], 4294967168 }
 0x22c   :  { %745 = vsyncpa [#allocation3], 1 }
 0x22d   :  { %746 = vsyncpa [#allocation4], 1 }

</bundles_post_ra>
